<compile_context>
chip_gen: v6e
topology: v6e:2x2x1
jax: 0.10.0
libtpu: 0.0.40
codegen_flags: <defaults>
</compile_context>

<pallas_src>
import functools

import jax
import jax.numpy as jnp
from jax.experimental import pallas as pl
from jax.experimental.pallas import tpu as pltpu

N_SCORES = 14
H1, H2, H3, H4 = 32, 16, 8, 1
NEG_SLOPE = 0.01            # torch.nn.functional.leaky_relu default slope
CHUNK = 512                 # in-kernel batch sub-block (lanes), keeps acts in vregs
TILE_CAP = 16384            # max batch tile per grid step (sweep 8192–32768)

# Packed weight slab layout (rows x cols), f32, shape (64, 33):
#   rows  0:32  cols  0:14 -> W1^T (32,14)   | col 32 -> b1 (32,1)
#   rows 32:48  cols  0:32 -> W2^T (16,32)   | col 32 -> b2 (16,1)
#   rows 48:56  cols  0:16 -> W3^T ( 8,16)   | col 32 -> b3 ( 8,1)
#   rows 56:64  col   0    -> W4   ( 8, 1)   | row 56, col 32 -> b4 (1,1)
SLAB_ROWS, SLAB_COLS = 64, 33


def _leaky_relu(x):
    return jnp.where(x > 0, x, NEG_SLOPE * x)


def _round_up(n, m):
    return ((n + m - 1) // m) * m


def emeqt_kernel(slab_ref, x_ref, o_ref, *, tile_b, chunk):
    # Weight slab slices: loaded once per grid step, stay vreg/VMEM resident.
    w1t = slab_ref[0:32, 0:14]    # (32, 14)
    b1 = slab_ref[0:32, 32:33]    # (32, 1)
    w2t = slab_ref[32:48, 0:32]   # (16, 32)
    b2 = slab_ref[32:48, 32:33]   # (16, 1)
    w3t = slab_ref[48:56, 0:16]   # (8, 16)
    b3 = slab_ref[48:56, 32:33]   # (8, 1)
    w4 = slab_ref[56:64, 0:1]     # (8, 1)
    b4 = slab_ref[56:57, 32:33]   # (1, 1)

    n_chunks = tile_b // chunk

    def body(c, carry):
        off = pl.multiple_of(c * chunk, chunk)
        x = x_ref[:, pl.ds(off, chunk)]            # (14, chunk), batch on lanes

        # fc1: (32,14) @ (14,chunk) + (32,1)
        # TODO(synk): dropout1 (p=0.1) is identity in inference mode.
        h = jnp.dot(w1t, x, preferred_element_type=jnp.float32) + b1
        h = _leaky_relu(h)

        # fc2: (16,32) @ (32,chunk) + (16,1)
        # TODO(synk): dropout2 (p=0.15) is identity in inference mode.
        h = jnp.dot(w2t, h, preferred_element_type=jnp.float32) + b2
        h = _leaky_relu(h)

        # fc3: (8,16) @ (16,chunk) + (8,1)
        # TODO(synk): dropout3 (p=0.15) is identity in inference mode.
        h = jnp.dot(w3t, h, preferred_element_type=jnp.float32) + b3
        h = _leaky_relu(h)

        # fc4 (8 -> 1): VPU broadcast-multiply + sublane reduce.
        y = jnp.sum(w4 * h, axis=0, keepdims=True) + b4        # (1, chunk)

        # sigmoid. Exact reciprocal (VALU divide, which has plenty of slack);
        # approx=True would use the EUP vrcp but its ~1e-3 rel. error breaks the
        # 1e-5 parity check against the reference.
        o_ref[:, pl.ds(off, chunk)] = pl.reciprocal(1.0 + jnp.exp(-y), approx=False)
        return carry

    jax.lax.fori_loop(0, n_chunks, body, 0, unroll=True)


def pack_params(params):
    """Pack (w1,b1,...,w4,b4) into one (64, 33) f32 slab (layout above)."""
    w1, b1, w2, b2, w3, b3, w4, b4 = params  # w: (in,out), b: (1,out)
    slab = jnp.zeros((SLAB_ROWS, SLAB_COLS), jnp.float32)
    slab = slab.at[0:32, 0:14].set(w1.T)
    slab = slab.at[0:32, 32:33].set(b1.T)
    slab = slab.at[32:48, 0:32].set(w2.T)
    slab = slab.at[32:48, 32:33].set(b2.T)
    slab = slab.at[48:56, 0:16].set(w3.T)
    slab = slab.at[48:56, 32:33].set(b3.T)
    slab = slab.at[56:64, 0:1].set(w4)       # w4 already (8, 1)
    slab = slab.at[56:57, 32:33].set(b4)     # b4 already (1, 1)
    return slab


def _choose_tile_b(batch):
    # Target >= 2 grid steps (so ("parallel",) shards the batch axis across both
    # v7x TensorCores) while amortizing the ~0.35 us per-grid-step overhead with
    # the largest tile up to TILE_CAP.
    t = _round_up(max(pl.cdiv(batch, 2), 1), 128)
    t = min(TILE_CAP, t)
    if t > CHUNK:
        t = _round_up(t, CHUNK)   # keep the in-kernel chunk loop exact
    return t


def emeqt_forward(scores_cm, params, tile_b=None):
    """EMEQT MLP head.

    scores_cm: (14, B) float32 — the 14 similarity scores per sentence pair,
      batch on the last (lane) dim.  Emitting features in this layout lets the
      kernel stream them directly (lane-dense DMAs, no transpose/pad pass).
    Returns (B, 1) float32 in (0, 1).
    """
    n_scores, batch = scores_cm.shape
    assert n_scores == N_SCORES
    scores_cm = scores_cm.astype(jnp.float32)
    slab = pack_params(params)

    if tile_b is None:
        tile_b = _choose_tile_b(batch)
    assert tile_b % 128 == 0, "tile_b must be a multiple of 128 (lane width)"
    assert tile_b <= CHUNK or tile_b % CHUNK == 0
    chunk = min(CHUNK, tile_b)

    # Last batch block may be partial: out-of-range lanes read independent
    # garbage and their results are never written back.
    grid = (pl.cdiv(batch, tile_b),)
    kernel = functools.partial(emeqt_kernel, tile_b=tile_b, chunk=chunk)

    out = pl.pallas_call(
        kernel,
        out_shape=jax.ShapeDtypeStruct((1, batch), jnp.float32),
        grid=grid,
        in_specs=[
            # Weight slab: one DMA, resident across all batch tiles.
            pl.BlockSpec((SLAB_ROWS, SLAB_COLS), lambda i: (0, 0)),
            # Input scores: tiled along batch (lanes).
            pl.BlockSpec((N_SCORES, tile_b), lambda i: (0, i)),
        ],
        out_specs=pl.BlockSpec((1, tile_b), lambda i: (0, i)),
        compiler_params=pltpu.CompilerParams(
            dimension_semantics=("parallel",),
            # Explicit scoped-VMEM budget (v5e default is only 16 MiB); our
            # footprint at tile_b=16384 is ~6 MiB double-buffered.
            vmem_limit_bytes=32 * 1024 * 1024,
        ),
    )(slab, scores_cm)

    return out.reshape(batch, 1)   # (1,B) and (B,1) share row-major layout


def emeqt_forward_rows(scores, params, tile_b=None):
    """Convenience wrapper for (B, 14) row-major scores.

    NOTE: the transpose costs one extra HBM read+write of the input; prefer
    emitting the feature matrix directly as (14, B)."""
    return emeqt_forward(scores.T, params, tile_b=tile_b)


def init_params(key):
    """Deterministic PyTorch-Linear-style init (uniform +-1/sqrt(fan_in))."""
    dims = [(N_SCORES, H1), (H1, H2), (H2, H3), (H3, H4)]
    params = []
    for i, (fin, fout) in enumerate(dims):
        kw, kb = jax.random.split(jax.random.fold_in(key, i))
        bound = 1.0 / jnp.sqrt(float(fin))
        w = jax.random.uniform(kw, (fin, fout), jnp.float32, -bound, bound)
        b = jax.random.uniform(kb, (1, fout), jnp.float32, -bound, bound)
        params += [w, b]
    return tuple(params)


def reference_forward(scores, params):
    """Pure-JAX reference: scores is (B, 14)."""
    w1, b1, w2, b2, w3, b3, w4, b4 = params
    h = _leaky_relu(scores @ w1 + b1)
    h = _leaky_relu(h @ w2 + b2)
    h = _leaky_relu(h @ w3 + b3)
    return jax.nn.sigmoid(h @ w4 + b4)


if __name__ == "__main__":
    key = jax.random.PRNGKey(0)
    k_params, k_small, k_big = jax.random.split(key, 3)
    params = init_params(k_params)

    # Batch of 2 "sentence pairs": 14 similarity scores in [0, 1] each (what the
    # NLP feature extraction would produce), already in (14, B) lane-major form.
    B = 2
    scores_cm = jax.random.uniform(k_small, (N_SCORES, B), jnp.float32, 0.0, 1.0)
    out = jax.block_until_ready(emeqt_forward(scores_cm, params))
    ref = reference_forward(scores_cm.T, params)
    assert out.shape == (B, 1)
    assert jnp.allclose(out, ref, atol=1e-5, rtol=1e-5), (out, ref)

    # Ragged batch: default tiling gives grid=(2,) with a partial last block
    # (exercises the megacore split + boundary-block handling).
    B2 = 300
    scores_cm2 = jax.random.uniform(k_big, (N_SCORES, B2), jnp.float32, 0.0, 1.0)
    out2 = jax.block_until_ready(emeqt_forward(scores_cm2, params))
    ref2 = reference_forward(scores_cm2.T, params)
    assert out2.shape == (B2, 1)
    assert jnp.allclose(out2, ref2, atol=1e-5, rtol=1e-5)

    # Row-major convenience path + explicit small tile (3 grid steps, chunk=128).
    out3 = jax.block_until_ready(
        emeqt_forward_rows(scores_cm2.T, params, tile_b=128))
    assert jnp.allclose(out3, ref2, atol=1e-5, rtol=1e-5)

    print("KERNEL_OK")
</pallas_src>

<mosaic_0001>
module attributes {stable_mosaic.version = 11 : i64} {
  func.func @emeqt_kernel(%arg0: i32, %arg1: memref<64x33xf32, #tpu.memory_space<vmem>>, %arg2: memref<14x128xf32, #tpu.memory_space<vmem>>, %arg3: memref<1x128xf32, #tpu.memory_space<vmem>>) attributes {dimension_semantics = [#tpu.dimension_semantics<parallel>], iteration_bounds = array<i64: 1>, scalar_prefetch = 0 : i64, scratch_operands = 0 : i64, tpu.core_type = #tpu.core_type<tc>, window_params = [{pipeline_mode = #tpu.pipeline_mode<synchronous>, transform_indices = @transform_0, window_bounds = array<i64: 64, 33>}, {transform_indices = @transform_1, window_bounds = array<i64: 14, 128>}, {transform_indices = @transform_2, window_bounds = array<i64: 1, 128>}]} {
    %c0 = arith.constant 0 : index
    %c0_0 = arith.constant 0 : index
    %0 = vector.load %arg1[%c0, %c0_0] : memref<64x33xf32, #tpu.memory_space<vmem>>, vector<32x14xf32>
    %c0_1 = arith.constant 0 : index
    %c32 = arith.constant 32 : index
    %1 = vector.load %arg1[%c0_1, %c32] : memref<64x33xf32, #tpu.memory_space<vmem>>, vector<32x1xf32>
    %c32_2 = arith.constant 32 : index
    %c0_3 = arith.constant 0 : index
    %2 = vector.load %arg1[%c32_2, %c0_3] : memref<64x33xf32, #tpu.memory_space<vmem>>, vector<16x32xf32>
    %c32_4 = arith.constant 32 : index
    %c32_5 = arith.constant 32 : index
    %3 = vector.load %arg1[%c32_4, %c32_5] : memref<64x33xf32, #tpu.memory_space<vmem>>, vector<16x1xf32>
    %c48 = arith.constant 48 : index
    %c0_6 = arith.constant 0 : index
    %4 = vector.load %arg1[%c48, %c0_6] : memref<64x33xf32, #tpu.memory_space<vmem>>, vector<8x16xf32>
    %c48_7 = arith.constant 48 : index
    %c32_8 = arith.constant 32 : index
    %5 = vector.load %arg1[%c48_7, %c32_8] : memref<64x33xf32, #tpu.memory_space<vmem>>, vector<8x1xf32>
    %c56 = arith.constant 56 : index
    %c0_9 = arith.constant 0 : index
    %6 = vector.load %arg1[%c56, %c0_9] : memref<64x33xf32, #tpu.memory_space<vmem>>, vector<8x1xf32>
    %c56_10 = arith.constant 56 : index
    %c32_11 = arith.constant 32 : index
    %7 = vector.load %arg1[%c56_10, %c32_11] : memref<64x33xf32, #tpu.memory_space<vmem>>, vector<1x1xf32>
    %c0_i32 = arith.constant 0 : i32
    %c128_i32 = arith.constant 128 : i32
    %8 = arith.muli %c0_i32, %c128_i32 : i32
    %9 = tpu.assume_multiple %8, 128 : i32
    %c0_12 = arith.constant 0 : index
    %10 = arith.index_cast %9 : i32 to index
    %11 = vector.load %arg2[%c0_12, %10] : memref<14x128xf32, #tpu.memory_space<vmem>>, vector<14x128xf32>
    %cst = arith.constant dense<0.000000e+00> : vector<32x128xf32>
    %12 = tpu.matmul %0, %11, %cst {dimension_numbers = #tpu.dot_dimension_numbers<[1], [0], [0], [1], [0, 0, 1, 1], [], []>} : vector<32x14xf32>, vector<14x128xf32>, vector<32x128xf32> -> vector<32x128xf32>
    %13 = vector.broadcast %1 : vector<32x1xf32> to vector<32x128xf32>
    %14 = arith.addf %12, %13 : vector<32x128xf32>
    %cst_13 = arith.constant 0.000000e+00 : f32
    %15 = vector.broadcast %cst_13 : f32 to vector<32x128xf32>
    %16 = arith.cmpf ogt, %14, %15 : vector<32x128xf32>
    %cst_14 = arith.constant 0.00999999977 : f32
    %17 = vector.broadcast %cst_14 : f32 to vector<32x128xf32>
    %18 = arith.mulf %17, %14 : vector<32x128xf32>
    %19 = arith.select %16, %14, %18 : vector<32x128xi1>, vector<32x128xf32>
    %cst_15 = arith.constant dense<0.000000e+00> : vector<16x128xf32>
    %20 = tpu.matmul %2, %19, %cst_15 {dimension_numbers = #tpu.dot_dimension_numbers<[1], [0], [0], [1], [0, 0, 1, 1], [], []>} : vector<16x32xf32>, vector<32x128xf32>, vector<16x128xf32> -> vector<16x128xf32>
    %21 = vector.broadcast %3 : vector<16x1xf32> to vector<16x128xf32>
    %22 = arith.addf %20, %21 : vector<16x128xf32>
    %cst_16 = arith.constant 0.000000e+00 : f32
    %23 = vector.broadcast %cst_16 : f32 to vector<16x128xf32>
    %24 = arith.cmpf ogt, %22, %23 : vector<16x128xf32>
    %cst_17 = arith.constant 0.00999999977 : f32
    %25 = vector.broadcast %cst_17 : f32 to vector<16x128xf32>
    %26 = arith.mulf %25, %22 : vector<16x128xf32>
    %27 = arith.select %24, %22, %26 : vector<16x128xi1>, vector<16x128xf32>
    %cst_18 = arith.constant dense<0.000000e+00> : vector<8x128xf32>
    %28 = tpu.matmul %4, %27, %cst_18 {dimension_numbers = #tpu.dot_dimension_numbers<[1], [0], [0], [1], [0, 0, 1, 1], [], []>} : vector<8x16xf32>, vector<16x128xf32>, vector<8x128xf32> -> vector<8x128xf32>
    %29 = vector.broadcast %5 : vector<8x1xf32> to vector<8x128xf32>
    %30 = arith.addf %28, %29 : vector<8x128xf32>
    %cst_19 = arith.constant 0.000000e+00 : f32
    %31 = vector.broadcast %cst_19 : f32 to vector<8x128xf32>
    %32 = arith.cmpf ogt, %30, %31 : vector<8x128xf32>
    %cst_20 = arith.constant 0.00999999977 : f32
    %33 = vector.broadcast %cst_20 : f32 to vector<8x128xf32>
    %34 = arith.mulf %33, %30 : vector<8x128xf32>
    %35 = arith.select %32, %30, %34 : vector<8x128xi1>, vector<8x128xf32>
    %36 = vector.broadcast %6 : vector<8x1xf32> to vector<8x128xf32>
    %37 = arith.mulf %36, %35 : vector<8x128xf32>
    %cst_21 = arith.constant dense<0.000000e+00> : vector<128xf32>
    %38 = vector.multi_reduction <add>, %37, %cst_21 [0] : vector<8x128xf32> to vector<128xf32>
    %39 = vector.shape_cast %38 : vector<128xf32> to vector<1x128xf32>
    %40 = vector.broadcast %7 : vector<1x1xf32> to vector<1x128xf32>
    %41 = arith.addf %39, %40 : vector<1x128xf32>
    %cst_22 = arith.constant 0.000000e+00 : f32
    %42 = vector.broadcast %cst_22 : f32 to vector<1x128xf32>
    %43 = arith.subf %42, %41 : vector<1x128xf32>
    %44 = math.exp %43 : vector<1x128xf32>
    %cst_23 = arith.constant 1.000000e+00 : f32
    %45 = vector.broadcast %cst_23 : f32 to vector<1x128xf32>
    %46 = arith.addf %45, %44 : vector<1x128xf32>
    %47 = tpu.reciprocal %46 : vector<1x128xf32> -> vector<1x128xf32>
    %c0_24 = arith.constant 0 : index
    %48 = arith.index_cast %9 : i32 to index
    %49 = vector.load %arg3[%c0_24, %48] : memref<1x128xf32, #tpu.memory_space<vmem>>, vector<1x128xf32>
    tpu.vector_store %arg3[%c0_24, %48], %47 {strides = array<i32>} : memref<1x128xf32, #tpu.memory_space<vmem>>, vector<1x128xf32>,
    %c1_i32 = arith.constant 1 : i32
    return
  }
  func.func @transform_0(%arg0: i32) -> (i32, i32) {
    %c0_i32 = arith.constant 0 : i32
    %c0_i32_0 = arith.constant 0 : i32
    %c0_i32_1 = arith.constant 0 : i32
    return %c0_i32, %c0_i32_0 : i32, i32
  }
  func.func @transform_1(%arg0: i32) -> (i32, i32) {
    %c0_i32 = arith.constant 0 : i32
    %c0_i32_0 = arith.constant 0 : i32
    return %c0_i32, %arg0 : i32, i32
  }
  func.func @transform_2(%arg0: i32) -> (i32, i32) {
    %c0_i32 = arith.constant 0 : i32
    %c0_i32_0 = arith.constant 0 : i32
    return %c0_i32, %arg0 : i32, i32
  }
}

</mosaic_0001>

<bundles_post_ra>
// kernel: tpu_custom_call.1
= control target key start
LH: loop header
LB: loop body
LE: loop exit
PB: predicated region body
PF: predicated region fallthrough
CT: control target
= control target key end

     0   :  { %vm52_vm0 = vcmask 1045504   ;;  %vm43_vm1 = vcmask 113664   ;;  %v453_v5 = vmov 32   ;;  %s519_s0 = inlined_call_operand.vmem [shape: f32[64,33], index: 0, kind: input, shape index: {}]   ;;  %s520_s1 = inlined_call_operand.vmem [shape: f32[14,2], index: 1, kind: input, shape index: {}]   ;;  %s521_s2 = inlined_call_operand.hbm [shape: f32[1,2], index: 2, kind: output, shape index: {}]  }
   0x1   :  { %v22_v0 = vld [vmem:[%s520_s1 + $0x8] sm:$0x3f]  ;;  %v21_v1 = vld [vmem:[%s520_s1] sm:$0xff]  ;;  %v15_v4 = vld [vmem:[%s519_s0 + $0x18] sm:$0xff]  ;;  %424 = vset.pattern.permute.xlu0 %v453_v5 }
   0x2   :  { %v12_v2 = vld [vmem:[%s519_s0] sm:$0xff]  ;;  %391 = vmatprep.subr.msk.mxu0 %vm52_vm0, %v22_v0  ;;  %v13_v3 = vld [vmem:[%s519_s0 + $0x8] sm:$0xff]  ;;  %v14_v6 = vld [vmem:[%s519_s0 + $0x10] sm:$0xff]  ;;  %40 = vperm.xlu0 %424, %v15_v4  }
   0x3   :  { %395 = vmatprep.mubr.msk.f32.mxu0 %vm43_vm1, %v12_v2  ;;  %392 = vmatpush3.msk.msra.mxu0 %vm52_vm0, %v22_v0 }
   0x4   :  { %393 = vmatprep.subr.mxu0 %v21_v1 }
   0x5   :  { %7 = vsyncpa [#allocation3], 0  ;;  %394 = vmatpush3.msra.mxu0 %v21_v1  ;;  %425 = vset.pattern.permute.xlu1 %v453_v5  ;;  %v17_v7 = vld [vmem:[%s519_s0 + $0x28] sm:$0xff]  ;;  %v16_v8 = vld [vmem:[%s519_s0 + $0x20] sm:$0xff]  ;;  %vm163_vm2 = vcmask 261120   ;;  %v454_v31 = vmov 0.0  }
   0x6   :  { %396 = vmatmul.mubr.msk.f32.vlgmr.msra.gmra.mxu0 %vm43_vm1, %v13_v3  ;;  %30 = vperm.xlu1 %425, %v13_v3   ;;  %v504_v9 = vld [vmem:[%s519_s0 + $0x30] sm:$0xff]  ;;  %v20_v10 = vld [vmem:[%s519_s0 + $0x38] sm:$0x1]  ;;  %vm455_vm7 = vmmov 0   ;;  %v456_v33 = vmov 0   ;;  %vm254_vm10 = vcmask 130048  }
   0x7   :  { %398 = vmatprep.mubr.msk.f32.mxu0 %vm43_vm1, %v14_v6  ;;  %35 = vperm.xlu0 %424, %v14_v6   ;;  %v19_v32 = vld [vmem:[%s519_s0 + $0x38] sm:$0xff]  ;;  %s457_s0 = smov [#allocation2]  }
   0x8   :  { %409 = vmatprep.mubr.msk.f32.mxu1 %vm163_vm2, %v16_v8  ;;  %412 = vmatprep.subr.mxu0 %v454_v31  ;;  %s360_s30 = sshll.u32 %s457_s0, 4  ;;  %s361_s30 = int_to_ptr.vmem [resolvable:$true] %s360_s30 }
   0x9   :  { %s431_s3 = scalar_lea.vmem %s361_s30, 16  ;;  %s435_s4 = scalar_lea.vmem %s361_s30, 32 }
   0xa   :  { %399 = vmatmul.mubr.msk.f32.gmra.mxu0 %vm43_vm1, %v15_v4  ;;  %25 = vperm.xlu1 %425, %v12_v2   ;;  %p432_p0 = scmp.ne.s32.totalorder %s361_s30, %s431_s3  ;;  %p436_p1 = scmp.lt.s32.totalorder %s361_s30, %s361_s30 }
   0xb   :  { %160 = vperm.xlu0 %424, %v17_v7   ;;  %416 = vmatprep.mubr.msk.f32.mxu0 %vm455_vm7, %v454_v31  ;;  %p437_p2 = scmp.lt.s32.totalorder %s435_s4, %s431_s3 }
   0xd   :  { %p438_p3 = por %p437_p2, %p436_p1 }
   0xe   :  { %155 = vperm.xlu1 %425, %v16_v8  }
   0xf   :  { %251 = vperm.xlu0 %424, %v504_v9   ;;  %p439_p4 = pnand %p438_p3, %p432_p0 }
  0x12   :  { %426 = vset.pattern.permute.xlu1 %v456_v33 }
  0x13   :  { %344 = vperm.xlu0 %424, %v20_v10   ;;  %332 = vperm.xlu1 %426, %v19_v32  }
  0x7d   :  { %v41_v12 = vpop.permute.xlu0 %40 }
  0x81   :  { %v31_v11 = vpop.permute.xlu1 %30 }
  0x82   :  { %v36_v19 = vpop.permute.xlu0 %35 }
  0x85   :  { %v26_v15 = vpop.permute.xlu1 %25 }
  0x86   :  { %v161_v34 = vpop.permute.xlu0 %160 }
  0x89   :  { %v156_v37 = vpop.permute.xlu1 %155 }
  0x8a   :  { %v252_v44 = vpop.permute.xlu0 %251 }
  0x8e   :  { %v333_v49 = vpop.permute.xlu1 %332  ;;  %v345_v58 = vpop.permute.xlu0 %344 }
  0xc6   :  { %v397_v13 = vpop.f32.mrf.mxu0 }
  0xc7   :  { %v128_v17 = vadd.f32 %v397_v13, %v31_v11 }
  0xc8   :  { %v122_v14 = vpop.f32.mrf.mxu0 }
  0xc9   :  { %v123_v21 = vadd.f32 %v122_v14, %v26_v15  ;;  %v146_v24 = vmul.f32 0.01, %v128_v17  ;;  %vm142_vm5 = vcmp.gt.f32.partialorder %v128_v17, 0.0 }
  0xca   :  { %v400_v16 = vpop.f32.mrf.mxu0 }
  0xcb   :  { %v138_v18 = vadd.f32 %v400_v16, %v41_v12  ;;  %v145_v27 = vmul.f32 0.01, %v123_v21  ;;  %vm141_vm6 = vcmp.gt.f32.partialorder %v123_v21, 0.0  ;;  %v150_v29 = vsel %vm142_vm5, %v128_v17, %v146_v24 }
  0xcc   :  { %v132_v20 = vpop.f32.mrf.mxu0 }
  0xcd   :  { %v133_v22 = vadd.f32 %v132_v20, %v36_v19  ;;  %vm144_vm3 = vcmp.gt.f32.partialorder %v138_v18, 0.0  ;;  %v148_v23 = vmul.f32 0.01, %v138_v18  ;;  %v149_v30 = vsel %vm141_vm6, %v123_v21, %v145_v27 }
  0xcf   :  { %v147_v25 = vmul.f32 0.01, %v133_v22  ;;  %v152_v26 = vsel %vm144_vm3, %v138_v18, %v148_v23  ;;  %vm143_vm4 = vcmp.gt.f32.partialorder %v133_v22, 0.0 }
  0xd0   :  { %401 = vmatprep.subr.mxu1 %v152_v26 }
  0xd1   :  { %402 = vmatpush3.msra.mxu1 %v152_v26  ;;  %v151_v28 = vsel %vm143_vm4, %v133_v22, %v147_v25 }
  0xd2   :  { %403 = vmatprep.subr.mxu1 %v151_v28 }
  0xd3   :  { %404 = vmatpush3.msra.mxu1 %v151_v28 }
  0xd4   :  { %405 = vmatprep.subr.mxu1 %v150_v29 }
  0xd5   :  { %406 = vmatpush3.msra.mxu1 %v150_v29 }
  0xd6   :  { %407 = vmatprep.subr.mxu1 %v149_v30 }
  0xd7   :  { %408 = vmatpush3.msra.mxu1 %v149_v30 }
  0xd8   :  { %410 = vmatmul.mubr.msk.f32.vlgmr.msra.gmra.mxu1 %vm163_vm2, %v17_v7 }
 0x198   :  { %v411_v35 = vpop.f32.mrf.mxu1 }
 0x199   :  { %v240_v36 = vadd.f32 %v411_v35, %v161_v34 }
 0x19a   :  { %v234_v38 = vpop.f32.mrf.mxu1 }
 0x19b   :  { %vm244_vm8 = vcmp.gt.f32.partialorder %v240_v36, 0.0  ;;  %v246_v39 = vmul.f32 0.01, %v240_v36  ;;  %v235_v40 = vadd.f32 %v234_v38, %v156_v37 }
 0x19d   :  { %vm243_vm9 = vcmp.gt.f32.partialorder %v235_v40, 0.0  ;;  %v245_v41 = vmul.f32 0.01, %v235_v40  ;;  %v248_v42 = vsel %vm244_vm8, %v240_v36, %v246_v39 }
 0x19e   :  { %413 = vmatpush3.msra.mxu0 %v248_v42 }
 0x19f   :  { %414 = vmatprep.subr.mxu0 %v454_v31  ;;  %v247_v43 = vsel %vm243_vm9, %v235_v40, %v245_v41 }
 0x1a0   :  { %415 = vmatpush3.msra.mxu0 %v247_v43 }
 0x1a1   :  { %417 = vmatmul.mubr.msk.f32.vlgmr.msra.gmra.mxu0 %vm254_vm10, %v504_v9 }
 0x261   :  { %v323_v45 = vpop.f32.mrf.mxu0 }
 0x262   :  { %v324_v46 = vadd.f32 %v323_v45, %v252_v44 }
 0x263   :  { %v418_v47 = vpop.f32.mrf.mxu0 }
 0x264   :  { %v328_v48 = vmul.f32 0.01, %v324_v46  ;;  %vm327_vm11 = vcmp.gt.f32.partialorder %v324_v46, 0.0 }
 0x266   :  { %v329_v50 = vsel %vm327_vm11, %v324_v46, %v328_v48 }
 0x267   :  { %v335_v51 = vmul.f32 %v333_v49, %v329_v50 }
 0x269   :  { %v336_v52 = vrot.slane %v335_v51, 4 }
 0x26b   :  { %v337_v53 = vadd.f32 %v336_v52, %v335_v51 }
 0x26d   :  { %v338_v54 = vrot.slane %v337_v53, 2 }
 0x26f   :  { %v339_v55 = vadd.f32 %v338_v54, %v337_v53 }
 0x271   :  { %v340_v56 = vrot.slane %v339_v55, 1 }
 0x273   :  { %v341_v57 = vadd.f32 %v340_v56, %v339_v55 }
 0x275   :  { %v347_v59 = vadd.f32 %v345_v58, %v341_v57 }
 0x277   :  { %v348_v60 = vsub.f32 0.0, %v347_v59 }
 0x279   :  { %v349_v61 = vmul.f32 1.442695, %v348_v60 }
 0x27b   :  { %427 = vpow2.f32 %v349_v61 }
 0x288   :  { %v428_v62 = vpop.eup %427 }
 0x289   :  { %v351_v63 = vadd.f32 1.0, %v428_v62 }
 0x28b   :  { %429 = vrcp.f32 %v351_v63 }
 0x298   :  { %v430_v0 = vpop.eup %429 }
 0x299   :  { %353 = vst [vmem:[#allocation2] sm:$0x1] %v430_v0 }
 0x29a   :  { %442 = shalt.err (!%p439_p4)
}
 0x29b   :  { %363 = dma.vmem_to_hbm [thread:$0]  %s361_s30, 16, %s521_s2, [#allocation3]  }
 0x29c   :  { %451 = dma.done.wait [#allocation3], 16  }
 0x29d   :  { %452 = vsyncadd [#allocation3], 4294967280 }
 0x29e   :  { %367 = vsyncpa [#allocation3], 1 }

</bundles_post_ra>
